<compile_context>
chip_gen: v6e
topology: v6e:2x2x1
jax: 0.10.0
libtpu: 0.0.40
codegen_flags: <defaults>
</compile_context>

<pallas_src>
import functools

import jax
import jax.numpy as jnp
from jax.experimental import pallas as pl
from jax.experimental.pallas import tpu as pltpu

_LANE = 128              # vreg lane width
_SUB = 8                 # vreg sublanes (f32)
_MAX_BLOCK_ROWS = 4096   # (4096, 128) f32 = 2 MiB per input block


def _num_tensorcores():
    """2 only on v7x (2 TensorCores per chip); 1 on v5e/v6e."""
    try:
        kind = jax.devices()[0].device_kind.lower()
    except Exception:
        return 1
    if "v7" in kind or "7x" in kind:
        return 2
    return 1


def _dice_kernel(x_ref, t_ref, inter_ref, denom_ref, *,
                 blocks_per_core, total_blocks, has_overhang):
    j = pl.program_id(1)  # reduction axis ("arbitrary")

    # Output blocks are revisited across j (their index_map depends only on
    # the core axis), so they stay resident in VMEM and act as accumulators.
    @pl.when(j == 0)
    def _():
        inter_ref[...] = jnp.zeros_like(inter_ref)
        denom_ref[...] = jnp.zeros_like(denom_ref)

    def accumulate():
        s = jax.nn.sigmoid(x_ref[...].astype(jnp.float32))
        t = t_ref[...].astype(jnp.float32)
        groups = x_ref.shape[0] // _SUB
        # Tile-aligned reshape: each (8, 128) group is exactly one f32 vreg,
        # so the axis-0 sum is a chain of vreg adds (VALU), no XLU traffic.
        inter_ref[0] += jnp.sum((s * t).reshape(groups, _SUB, _LANE), axis=0)
        denom_ref[0] += jnp.sum((s + t).reshape(groups, _SUB, _LANE), axis=0)

    if has_overhang:
        # Kill the (clamped, duplicate) overhang block of the core split at
        # block granularity -- no per-element masking anywhere.
        blk = pl.program_id(0) * blocks_per_core + j
        pl.when(blk < total_blocks)(accumulate)
    else:
        accumulate()


def dice_loss(inputs, targets, smooth=1.0, cores=None):
    """Pallas implementation of DiceLoss.forward. Returns a scalar f32."""
    x = inputs.reshape(-1)
    t = targets.reshape(-1)
    if t.dtype == jnp.bool_:
        t = t.astype(jnp.int8)  # 1-byte stream; cast to f32 happens in-kernel
    n = x.shape[0]

    # Exactly-tileable prefix: rows is a multiple of 8, lanes are 128.
    chunk = _SUB * _LANE                      # 1024
    rows = (n // chunk) * _SUB                # rows of the aligned prefix
    block_rows = min(_MAX_BLOCK_ROWS, rows)   # multiple of 8 (or 0)
    total_blocks = rows // block_rows if block_rows else 0
    rows_kernel = total_blocks * block_rows
    n_kern = rows_kernel * _LANE

    inter = jnp.float32(0.0)
    denom = jnp.float32(0.0)

    if total_blocks > 0:
        # Prefix view: a pure (free) reshape when n == n_kern; only misaligned
        # inputs pay a small prefix copy (no full-array pad, no writeback of
        # padding, no in-kernel mask).
        x2 = x[:n_kern].reshape(rows_kernel, _LANE)
        t2 = t[:n_kern].reshape(rows_kernel, _LANE)

        num_cores = min(_num_tensorcores() if cores is None else int(cores),
                        total_blocks)
        num_cores = max(num_cores, 1)
        blocks_per_core = -(-total_blocks // num_cores)
        has_overhang = num_cores * blocks_per_core != total_blocks

        if has_overhang:
            def in_map(c, j):
                blk = c * blocks_per_core + j
                return (jnp.minimum(blk, total_blocks - 1), 0)  # in-bounds DMA
        else:
            def in_map(c, j):
                return (c * blocks_per_core + j, 0)

        def out_map(c, j):
            return (c, 0, 0)

        acc_shape = jax.ShapeDtypeStruct((num_cores, _SUB, _LANE), jnp.float32)
        kernel = functools.partial(
            _dice_kernel, blocks_per_core=blocks_per_core,
            total_blocks=total_blocks, has_overhang=has_overhang)

        out_bytes = 2 * num_cores * _SUB * _LANE * 4
        cost = pl.CostEstimate(
            flops=8 * n_kern, transcendentals=n_kern,
            bytes_accessed=n_kern * (x2.dtype.itemsize + t2.dtype.itemsize)
            + out_bytes)

        inter_p, denom_p = pl.pallas_call(
            kernel,
            out_shape=(acc_shape, acc_shape),
            grid_spec=pltpu.PrefetchScalarGridSpec(
                num_scalar_prefetch=0,
                grid=(num_cores, blocks_per_core),
                in_specs=[
                    pl.BlockSpec((block_rows, _LANE), in_map),
                    pl.BlockSpec((block_rows, _LANE), in_map),
                ],
                out_specs=[
                    pl.BlockSpec((1, _SUB, _LANE), out_map),
                    pl.BlockSpec((1, _SUB, _LANE), out_map),
                ],
            ),
            compiler_params=pltpu.CompilerParams(
                dimension_semantics=("parallel", "arbitrary"),
                vmem_limit_bytes=32 * 1024 * 1024),
            cost_estimate=cost,
        )(x2, t2)

        inter = inter + jnp.sum(inter_p)
        denom = denom + jnp.sum(denom_p)

    # Remainder (< block_rows*128 + 1023 elements): plain JAX, read once.
    if n_kern < n:
        s_tail = jax.nn.sigmoid(x[n_kern:].astype(jnp.float32))
        t_tail = t[n_kern:].astype(jnp.float32)
        inter = inter + jnp.sum(s_tail * t_tail)
        denom = denom + jnp.sum(s_tail) + jnp.sum(t_tail)

    dice = (2.0 * inter + smooth) / (denom + smooth)
    return (1.0 - dice).astype(jnp.float32)


def _dice_loss_ref(inputs, targets, smooth=1.0):
    s = jax.nn.sigmoid(inputs.reshape(-1).astype(jnp.float32))
    t = targets.reshape(-1).astype(jnp.float32)
    inter = jnp.sum(s * t)
    dice = (2.0 * inter + smooth) / (jnp.sum(s) + jnp.sum(t) + smooth)
    return 1.0 - dice


if __name__ == "__main__":
    key = jax.random.PRNGKey(0)
    k1, k2, k3, k4, k5, k6 = jax.random.split(key, 6)

    # Primary small shape (NCHW, as SAM mask-decoder logits would be).
    x = jax.random.normal(k1, (2, 4, 16, 16), dtype=jnp.float32)
    tgt = (jax.random.uniform(k2, (2, 4, 16, 16)) > 0.5).astype(jnp.float32)
    loss = jax.block_until_ready(dice_loss(x, tgt, smooth=1.0))
    ref = jax.block_until_ready(_dice_loss_ref(x, tgt, smooth=1.0))
    assert jnp.allclose(loss, ref, rtol=1e-4, atol=1e-5), (loss, ref)

    # Misaligned shape: exercises the mask-free JAX tail path.
    xb = jax.random.normal(k3, (1, 3, 37, 53), dtype=jnp.float32)
    tb = (jax.random.uniform(k4, (1, 3, 37, 53)) > 0.5).astype(jnp.float32)
    lb = jax.block_until_ready(dice_loss(xb, tb, smooth=1.0))
    rb = jax.block_until_ready(_dice_loss_ref(xb, tb, smooth=1.0))
    assert jnp.allclose(lb, rb, rtol=1e-4, atol=1e-5), (lb, rb)

    # Multi-block shape with a forced 2-way core split: exercises the
    # block-granularity overhang gate and the row-remainder tail.
    xc = jax.random.normal(k5, (2, 8, 320, 320), dtype=jnp.float32)
    tc = (jax.random.uniform(k6, (2, 8, 320, 320)) > 0.5).astype(jnp.float32)
    lc = jax.block_until_ready(dice_loss(xc, tc, smooth=1.0, cores=2))
    rc = jax.block_until_ready(_dice_loss_ref(xc, tc, smooth=1.0))
    assert jnp.allclose(lc, rc, rtol=1e-4, atol=1e-5), (lc, rc)

    # Same big shape with auto-detected core count (1 on v5e/v6e, 2 on v7x).
    ld = jax.block_until_ready(dice_loss(xc, tc, smooth=1.0))
    assert jnp.allclose(ld, rc, rtol=1e-4, atol=1e-5), (ld, rc)

    print("KERNEL_OK")
</pallas_src>

<mosaic_0001>
module attributes {stable_mosaic.version = 11 : i64} {
  func.func @_dice_kernel(%arg0: i32, %arg1: i32, %arg2: memref<16x128xf32, #tpu.memory_space<vmem>>, %arg3: memref<16x128xf32, #tpu.memory_space<vmem>>, %arg4: memref<1x8x128xf32, #tpu.memory_space<vmem>>, %arg5: memref<1x8x128xf32, #tpu.memory_space<vmem>>) attributes {dimension_semantics = [#tpu.dimension_semantics<parallel>, #tpu.dimension_semantics<arbitrary>], iteration_bounds = array<i64: 1, 1>, scalar_prefetch = 0 : i64, scratch_operands = 0 : i64, tpu.core_type = #tpu.core_type<tc>, window_params = [{transform_indices = @transform_0, window_bounds = array<i64: 16, 128>}, {transform_indices = @transform_1, window_bounds = array<i64: 16, 128>}, {transform_indices = @transform_2, window_bounds = array<i64: 1, 8, 128>}, {transform_indices = @transform_3, window_bounds = array<i64: 1, 8, 128>}]} {
    %c0_i32 = arith.constant 0 : i32
    %0 = arith.cmpi eq, %arg1, %c0_i32 : i32
    %1 = arith.extui %0 : i1 to i32
    %c0_i32_0 = arith.constant 0 : i32
    %2 = arith.cmpi ne, %1, %c0_i32_0 : i32
    scf.if %2 {
      %cst_18 = arith.constant 0.000000e+00 : f32
      %28 = vector.broadcast %cst_18 : f32 to vector<1x8x128xf32>
      %c0_19 = arith.constant 0 : index
      %c0_20 = arith.constant 0 : index
      %c0_21 = arith.constant 0 : index
      %29 = vector.load %arg4[%c0_19, %c0_20, %c0_21] : memref<1x8x128xf32, #tpu.memory_space<vmem>>, vector<1x8x128xf32>
      tpu.vector_store %arg4[%c0_19, %c0_20, %c0_21], %28 {strides = array<i32>} : memref<1x8x128xf32, #tpu.memory_space<vmem>>, vector<1x8x128xf32>,
      %cst_22 = arith.constant 0.000000e+00 : f32
      %30 = vector.broadcast %cst_22 : f32 to vector<1x8x128xf32>
      %c0_23 = arith.constant 0 : index
      %c0_24 = arith.constant 0 : index
      %c0_25 = arith.constant 0 : index
      %31 = vector.load %arg5[%c0_23, %c0_24, %c0_25] : memref<1x8x128xf32, #tpu.memory_space<vmem>>, vector<1x8x128xf32>
      tpu.vector_store %arg5[%c0_23, %c0_24, %c0_25], %30 {strides = array<i32>} : memref<1x8x128xf32, #tpu.memory_space<vmem>>, vector<1x8x128xf32>,
    } else {
    }
    %c0 = arith.constant 0 : index
    %c0_1 = arith.constant 0 : index
    %3 = vector.load %arg2[%c0, %c0_1] : memref<16x128xf32, #tpu.memory_space<vmem>>, vector<16x128xf32>
    %4 = arith.negf %3 : vector<16x128xf32>
    %5 = math.exp %4 : vector<16x128xf32>
    %cst = arith.constant 1.000000e+00 : f32
    %6 = vector.broadcast %cst : f32 to vector<16x128xf32>
    %7 = arith.addf %6, %5 : vector<16x128xf32>
    %8 = arith.divf %6, %7 : vector<16x128xf32>
    %c0_2 = arith.constant 0 : index
    %c0_3 = arith.constant 0 : index
    %9 = vector.load %arg3[%c0_2, %c0_3] : memref<16x128xf32, #tpu.memory_space<vmem>>, vector<16x128xf32>
    %c0_4 = arith.constant 0 : index
    %c0_5 = arith.constant 0 : index
    %c0_6 = arith.constant 0 : index
    %10 = vector.load %arg4[%c0_4, %c0_5, %c0_6] : memref<1x8x128xf32, #tpu.memory_space<vmem>>, vector<1x8x128xf32>
    %11 = vector.shape_cast %10 : vector<1x8x128xf32> to vector<8x128xf32>
    %12 = arith.mulf %8, %9 : vector<16x128xf32>
    %13 = vector.shape_cast %12 : vector<16x128xf32> to vector<2x8x128xf32>
    %cst_7 = arith.constant dense<0.000000e+00> : vector<8x128xf32>
    %14 = vector.multi_reduction <add>, %13, %cst_7 [0] : vector<2x8x128xf32> to vector<8x128xf32>
    %15 = arith.addf %11, %14 : vector<8x128xf32>
    %c0_8 = arith.constant 0 : index
    %c0_9 = arith.constant 0 : index
    %c0_10 = arith.constant 0 : index
    %16 = vector.load %arg4[%c0_8, %c0_9, %c0_10] : memref<1x8x128xf32, #tpu.memory_space<vmem>>, vector<1x8x128xf32>
    %17 = vector.shape_cast %16 : vector<1x8x128xf32> to vector<8x128xf32>
    %18 = vector.shape_cast %15 : vector<8x128xf32> to vector<1x8x128xf32>
    tpu.vector_store %arg4[%c0_8, %c0_9, %c0_10], %18 {strides = array<i32>} : memref<1x8x128xf32, #tpu.memory_space<vmem>>, vector<1x8x128xf32>,
    %c0_11 = arith.constant 0 : index
    %c0_12 = arith.constant 0 : index
    %c0_13 = arith.constant 0 : index
    %19 = vector.load %arg5[%c0_11, %c0_12, %c0_13] : memref<1x8x128xf32, #tpu.memory_space<vmem>>, vector<1x8x128xf32>
    %20 = vector.shape_cast %19 : vector<1x8x128xf32> to vector<8x128xf32>
    %21 = arith.addf %8, %9 : vector<16x128xf32>
    %22 = vector.shape_cast %21 : vector<16x128xf32> to vector<2x8x128xf32>
    %cst_14 = arith.constant dense<0.000000e+00> : vector<8x128xf32>
    %23 = vector.multi_reduction <add>, %22, %cst_14 [0] : vector<2x8x128xf32> to vector<8x128xf32>
    %24 = arith.addf %20, %23 : vector<8x128xf32>
    %c0_15 = arith.constant 0 : index
    %c0_16 = arith.constant 0 : index
    %c0_17 = arith.constant 0 : index
    %25 = vector.load %arg5[%c0_15, %c0_16, %c0_17] : memref<1x8x128xf32, #tpu.memory_space<vmem>>, vector<1x8x128xf32>
    %26 = vector.shape_cast %25 : vector<1x8x128xf32> to vector<8x128xf32>
    %27 = vector.shape_cast %24 : vector<8x128xf32> to vector<1x8x128xf32>
    tpu.vector_store %arg5[%c0_15, %c0_16, %c0_17], %27 {strides = array<i32>} : memref<1x8x128xf32, #tpu.memory_space<vmem>>, vector<1x8x128xf32>,
    return
  }
  func.func @transform_0(%arg0: i32, %arg1: i32) -> (i32, i32) {
    %c1_i32 = arith.constant 1 : i32
    %0 = arith.muli %arg0, %c1_i32 : i32
    %1 = arith.addi %0, %arg1 : i32
    %c0_i32 = arith.constant 0 : i32
    %c0_i32_0 = arith.constant 0 : i32
    return %1, %c0_i32 : i32, i32
  }
  func.func @transform_1(%arg0: i32, %arg1: i32) -> (i32, i32) {
    %c1_i32 = arith.constant 1 : i32
    %0 = arith.muli %arg0, %c1_i32 : i32
    %1 = arith.addi %0, %arg1 : i32
    %c0_i32 = arith.constant 0 : i32
    %c0_i32_0 = arith.constant 0 : i32
    return %1, %c0_i32 : i32, i32
  }
  func.func @transform_2(%arg0: i32, %arg1: i32) -> (i32, i32, i32) {
    %c0_i32 = arith.constant 0 : i32
    %c0_i32_0 = arith.constant 0 : i32
    %c0_i32_1 = arith.constant 0 : i32
    return %arg0, %c0_i32, %c0_i32_0 : i32, i32, i32
  }
  func.func @transform_3(%arg0: i32, %arg1: i32) -> (i32, i32, i32) {
    %c0_i32 = arith.constant 0 : i32
    %c0_i32_0 = arith.constant 0 : i32
    %c0_i32_1 = arith.constant 0 : i32
    return %arg0, %c0_i32, %c0_i32_0 : i32, i32, i32
  }
}

</mosaic_0001>

<bundles_post_ra>
// kernel: tpu_custom_call.1
= control target key start
LH: loop header
LB: loop body
LE: loop exit
PB: predicated region body
PF: predicated region fallthrough
CT: control target
= control target key end

     0   :  { %9 = vsyncpa [#allocation3], 0  ;;  %s262_s0 = inlined_call_operand.hbm [shape: f32[16,128], index: 0, kind: input, shape index: {}]   ;;  %s263_s1 = inlined_call_operand.hbm [shape: f32[16,128], index: 1, kind: input, shape index: {}]   ;;  %s264_s2 = inlined_call_operand.hbm [shape: f32[1,8,128], index: 2, kind: output, shape index: {0}]   ;;  %s265_s3 = inlined_call_operand.hbm [shape: f32[1,8,128], index: 3, kind: output, shape index: {1}]  }
   0x1   :  { %10 = vsyncpa [#allocation6], 0 }
   0x2   :  { %11 = vsyncpa [#allocation4], 0 }
   0x3   :  { %12 = vsyncpa [#allocation9], 0  ;;  %s224_s12 = smov [#allocation2]  }
   0x4   :  { %s22_s13 = sshll.u32 %s224_s12, 4  ;;  %s23_s13 = int_to_ptr.vmem [resolvable:$true] %s22_s13 }
   0x5   :  { %s144_s14 = scalar_lea.vmem %s23_s13, 256  ;;  %p149_p1 = scmp.lt.s32.totalorder %s23_s13, %s23_s13 }
   0x6   :  { %p145_p0 = scmp.ne.s32.totalorder %s23_s13, %s144_s14  ;;  %p150_p2 = scmp.lt.s32.totalorder %s144_s14, %s144_s14 }
   0x8   :  { %p151_p3 = por %p150_p2, %p149_p1 }
   0xa   :  { %p152_p4 = pnand %p151_p3, %p145_p0 }
   0xc   :  { %155 = shalt.err (!%p152_p4)
}
   0xd   :  { %s225_s15 = smov 128   ;;  %s226_s16 = smov 8  }
   0xe   :  { %28 = dma.hbm_to_vmem [thread:$0]  %s262_s0, 256, %s23_s13, [#allocation3], %s225_s15, %s225_s15, %s226_s16  }
   0xf   :  { %s227_s19 = smov [#allocation5]  }
  0x10   :  { %s38_s20 = sshll.u32 %s227_s19, 4  ;;  %s39_s20 = int_to_ptr.vmem [resolvable:$true] %s38_s20 }
  0x11   :  { %s164_s21 = scalar_lea.vmem %s39_s20, 256  ;;  %p169_p6 = scmp.lt.s32.totalorder %s39_s20, %s39_s20 }
  0x12   :  { %p165_p5 = scmp.ne.s32.totalorder %s39_s20, %s164_s21  ;;  %p170_p7 = scmp.lt.s32.totalorder %s164_s21, %s164_s21 }
  0x14   :  { %p171_p8 = por %p170_p7, %p169_p6 }
  0x16   :  { %p172_p9 = pnand %p171_p8, %p165_p5 }
  0x18   :  { %175 = shalt.err (!%p172_p9)
}
  0x19   :  { %44 = dma.hbm_to_vmem [thread:$0]  %s263_s1, 256, %s39_s20, [#allocation6], %s225_s15, %s225_s15, %s226_s16  }
  0x1a   :  { %216 = dma.done.wait [#allocation3], 256  }
  0x1b   :  { %217 = vsyncadd [#allocation3], 4294967040 }
  0x1c   :  { %218 = dma.done.wait [#allocation6], 256  }
  0x1d   :  { %219 = vsyncadd [#allocation6], 4294967040  ;;  %v61_v0 = vld [vmem:[#allocation2] sm:$0xff]  ;;  %v62_v1 = vld [vmem:[#allocation2 + $0x8] sm:$0xff]  ;;  %s228_s0 = smov [#allocation7]   ;;  %s229_s24 = smov [#allocation8]  }
  0x1e   :  { %v119_v2 = vmul.f32 -1.442695, %v61_v0  ;;  %v120_v3 = vmul.f32 -1.442695, %v62_v1  ;;  %v75_v8 = vld [vmem:[#allocation5] sm:$0xff]  ;;  %v76_v9 = vld [vmem:[#allocation5 + $0x8] sm:$0xff] }
  0x1f   :  { %s95_s1 = sshll.u32 %s228_s0, 4  ;;  %s105_s25 = sshll.u32 %s229_s24, 4  ;;  %s96_s1 = int_to_ptr.vmem [resolvable:$true] %s95_s1  ;;  %s106_s25 = int_to_ptr.vmem [resolvable:$true] %s105_s25 }
  0x20   :  { %128 = vpow2.f32 %v119_v2  ;;  %s176_s26 = scalar_lea.vmem %s96_s1, 128  ;;  %p181_p11 = scmp.lt.s32.totalorder %s96_s1, %s96_s1 }
  0x21   :  { %130 = vpow2.f32 %v120_v3  ;;  %p177_p10 = scmp.ne.s32.totalorder %s96_s1, %s176_s26  ;;  %p182_p12 = scmp.lt.s32.totalorder %s176_s26, %s176_s26 }
  0x23   :  { %p183_p13 = por %p182_p12, %p181_p11 }
  0x25   :  { %p184_p0 = pnand %p183_p13, %p177_p10 }
  0x2d   :  { %v129_v4 = vpop.eup %128 }
  0x2e   :  { %v131_v5 = vpop.eup %130  ;;  %v69_v6 = vadd.f32 1.0, %v129_v4 }
  0x2f   :  { %v70_v7 = vadd.f32 1.0, %v131_v5 }
  0x30   :  { %132 = vrcp.f32 %v69_v6 }
  0x31   :  { %134 = vrcp.f32 %v70_v7 }
  0x3d   :  { %v133_v10 = vpop.eup %132 }
  0x3e   :  { %v135_v11 = vpop.eup %134  ;;  %v78_v12 = vmul.f32 %v133_v10, %v75_v8  ;;  %v84_v13 = vadd.f32 %v133_v10, %v75_v8 }
  0x3f   :  { %v79_v14 = vmul.f32 %v135_v11, %v76_v9  ;;  %v85_v15 = vadd.f32 %v135_v11, %v76_v9 }
  0x41   :  { %v80_v16 = vadd.f32 %v79_v14, %v78_v12  ;;  %v86_v17 = vadd.f32 %v85_v15, %v84_v13 }
  0x43   :  { %82 = vst [vmem:[#allocation7] sm:$0xff] %v80_v16  ;;  %88 = vst [vmem:[#allocation8] sm:$0xff] %v86_v17 }
  0x44   :  { %187 = shalt.err (!%p184_p0)
}
  0x45   :  { %98 = dma.vmem_to_hbm [thread:$0]  %s96_s1, 128, %s264_s2, [#allocation4]  }
  0x46   :  { %s196_s29 = scalar_lea.vmem %s106_s25, 128  ;;  %p201_p2 = scmp.lt.s32.totalorder %s106_s25, %s106_s25 }
  0x47   :  { %p197_p1 = scmp.ne.s32.totalorder %s106_s25, %s196_s29  ;;  %p202_p3 = scmp.lt.s32.totalorder %s196_s29, %s196_s29 }
  0x49   :  { %p203_p4 = por %p202_p3, %p201_p2 }
  0x4b   :  { %p204_p5 = pnand %p203_p4, %p197_p1 }
  0x4d   :  { %207 = shalt.err (!%p204_p5)
}
  0x4e   :  { %108 = dma.vmem_to_hbm [thread:$0]  %s106_s25, 128, %s265_s3, [#allocation9]  }
  0x4f   :  { %220 = dma.done.wait [#allocation4], 128  }
  0x50   :  { %221 = vsyncadd [#allocation4], 4294967168 }
  0x51   :  { %222 = dma.done.wait [#allocation9], 128  }
  0x52   :  { %223 = vsyncadd [#allocation9], 4294967168 }
  0x53   :  { %115 = vsyncpa [#allocation3], 1 }
  0x54   :  { %116 = vsyncpa [#allocation6], 1 }
  0x55   :  { %117 = vsyncpa [#allocation4], 1 }
  0x56   :  { %118 = vsyncpa [#allocation9], 1 }

</bundles_post_ra>
